<compile_context>
chip_gen: v7x
topology: tpu7x:2x2x1
jax: 0.10.0
libtpu: 0.0.40
codegen_flags: <defaults>
</compile_context>

<pallas_src>
import jax
import jax.numpy as jnp
from jax.experimental import pallas as pl
from jax.experimental.pallas import tpu as pltpu


def _round_up(x: int, m: int) -> int:
    return ((x + m - 1) // m) * m


def ridge_forward_kernel(x_ref, w_ref, b_ref, o_ref):
    # MXU matmul with f32 accumulation + broadcasted bias add on the VPU.
    acc = jnp.dot(x_ref[...], w_ref[...], preferred_element_type=jnp.float32)
    o_ref[...] = (acc + b_ref[...]).astype(o_ref.dtype)


def _choose_row_tile(N: int, D: int, d: int, block_rows: int,
                     vmem_budget_bytes: int) -> int:
    """Pick an 8-aligned row tile that divides N evenly-ish and fits VMEM."""
    block_rows = max(_round_up(block_rows, 8), 8)      # keep (8,128) rule valid
    num_tiles = max(pl.cdiv(N, block_rows), 1)
    # v7x has 2 TensorCores; prefer an even number of row tiles when there is
    # enough work to split the "parallel" axis (harmless on 1-TC v5e / v6e).
    if num_tiles % 2 == 1 and N > 2 * 512:
        num_tiles += 1
    tm = _round_up(pl.cdiv(N, num_tiles), 8)
    # VMEM budget: double-buffered X and out row tiles + resident W / b.
    bytes_per_row = 2 * 4 * (D + d)
    fixed = 4 * (D * d + d)
    max_rows = max((vmem_budget_bytes - fixed) // max(bytes_per_row, 1), 8)
    max_rows = max((max_rows // 8) * 8, 8)
    return min(tm, max_rows, _round_up(N, 8))


def ridge_forward(x: jax.Array, w: jax.Array, b: jax.Array,
                  *, block_rows: int = 2048,
                  vmem_budget_bytes: int = 24 * 1024 * 1024) -> jax.Array:
    """Compute X @ W + b with a row-tiled, unpadded Pallas kernel."""
    N, D = x.shape
    Dw, d = w.shape
    assert D == Dw, "X feature dim must match W rows"
    assert b.shape == (d,)

    tm = _choose_row_tile(N, D, d, block_rows, vmem_budget_bytes)
    grid = (pl.cdiv(N, tm),)

    b2 = b.reshape(1, d)  # 2D so the bias lives lane-major in VMEM

    cost = pl.CostEstimate(
        flops=2 * N * D * d,
        transcendentals=0,
        bytes_accessed=4 * (N * D + D * d + N * d + d),
    )

    return pl.pallas_call(
        ridge_forward_kernel,
        out_shape=jax.ShapeDtypeStruct((N, d), x.dtype),
        grid=grid,
        in_specs=[
            pl.BlockSpec((tm, D), lambda i: (i, 0)),   # streamed row tiles of X
            pl.BlockSpec((D, d), lambda i: (0, 0)),    # W resident across grid
            pl.BlockSpec((1, d), lambda i: (0, 0)),    # bias resident
        ],
        out_specs=pl.BlockSpec((tm, d), lambda i: (i, 0)),
        compiler_params=pltpu.CompilerParams(
            dimension_semantics=("parallel",),  # independent row tiles
        ),
        cost_estimate=cost,
    )(x, w, b2)


if __name__ == "__main__":
    # Small shapes consistent with the module: X (N, D), targets dim d.
    N, D, d = 8, 32, 16

    key = jax.random.PRNGKey(0)
    kx, kw, kb = jax.random.split(key, 3)

    x = jax.random.normal(kx, (N, D), dtype=jnp.float32)
    # Deterministic synthetic "fitted" parameters.
    # TODO(synk): RidgeModule.fit (centered normal-equations solve via
    # torch.linalg.solve) is a training-time linalg routine, not part of the
    # forward hot path; omitted.
    w = jax.random.normal(kw, (D, d), dtype=jnp.float32) * 0.1
    b = jax.random.normal(kb, (d,), dtype=jnp.float32) * 0.1

    out = jax.block_until_ready(ridge_forward(x, w, b))
    ref = x @ w + b
    assert out.shape == (N, d)
    assert jnp.allclose(out, ref, atol=1e-5, rtol=1e-5)

    # Multi-tile path with a ragged last row tile (N2 not a tile multiple).
    N2 = 1030
    x2 = jax.random.normal(kx, (N2, D), dtype=jnp.float32)
    out2 = jax.block_until_ready(ridge_forward(x2, w, b, block_rows=512))
    ref2 = x2 @ w + b
    assert out2.shape == (N2, d)
    assert jnp.allclose(out2, ref2, atol=1e-4, rtol=1e-4)

    print("KERNEL_OK")
</pallas_src>

<mosaic_0001>
module attributes {stable_mosaic.version = 11 : i64} {
  func.func @ridge_forward_kernel(%arg0: i32, %arg1: memref<8x32xf32, #tpu.memory_space<vmem>>, %arg2: memref<32x16xf32, #tpu.memory_space<vmem>>, %arg3: memref<1x16xf32, #tpu.memory_space<vmem>>, %arg4: memref<8x16xf32, #tpu.memory_space<vmem>>) attributes {dimension_semantics = [#tpu.dimension_semantics<parallel>], iteration_bounds = array<i64: 1>, scalar_prefetch = 0 : i64, scratch_operands = 0 : i64, tpu.core_type = #tpu.core_type<tc>, window_params = [{transform_indices = @transform_0, window_bounds = array<i64: 8, 32>}, {pipeline_mode = #tpu.pipeline_mode<synchronous>, transform_indices = @transform_1, window_bounds = array<i64: 32, 16>}, {pipeline_mode = #tpu.pipeline_mode<synchronous>, transform_indices = @transform_2, window_bounds = array<i64: 1, 16>}, {transform_indices = @transform_3, window_bounds = array<i64: 8, 16>}]} {
    %c0 = arith.constant 0 : index
    %c0_0 = arith.constant 0 : index
    %0 = vector.load %arg1[%c0, %c0_0] : memref<8x32xf32, #tpu.memory_space<vmem>>, vector<8x32xf32>
    %c0_1 = arith.constant 0 : index
    %c0_2 = arith.constant 0 : index
    %1 = vector.load %arg2[%c0_1, %c0_2] : memref<32x16xf32, #tpu.memory_space<vmem>>, vector<32x16xf32>
    %cst = arith.constant dense<0.000000e+00> : vector<8x16xf32>
    %2 = tpu.matmul %0, %1, %cst {dimension_numbers = #tpu.dot_dimension_numbers<[1], [0], [0], [1], [0, 0, 1, 1], [], []>} : vector<8x32xf32>, vector<32x16xf32>, vector<8x16xf32> -> vector<8x16xf32>
    %c0_3 = arith.constant 0 : index
    %c0_4 = arith.constant 0 : index
    %3 = vector.load %arg3[%c0_3, %c0_4] : memref<1x16xf32, #tpu.memory_space<vmem>>, vector<1x16xf32>
    %4 = vector.broadcast %3 : vector<1x16xf32> to vector<8x16xf32>
    %5 = arith.addf %2, %4 : vector<8x16xf32>
    %c0_5 = arith.constant 0 : index
    %c0_6 = arith.constant 0 : index
    %6 = vector.load %arg4[%c0_5, %c0_6] : memref<8x16xf32, #tpu.memory_space<vmem>>, vector<8x16xf32>
    tpu.vector_store %arg4[%c0_5, %c0_6], %5 {strides = array<i32>} : memref<8x16xf32, #tpu.memory_space<vmem>>, vector<8x16xf32>,
    return
  }
  func.func @transform_0(%arg0: i32) -> (i32, i32) {
    %c0_i32 = arith.constant 0 : i32
    %c0_i32_0 = arith.constant 0 : i32
    return %arg0, %c0_i32 : i32, i32
  }
  func.func @transform_1(%arg0: i32) -> (i32, i32) {
    %c0_i32 = arith.constant 0 : i32
    %c0_i32_0 = arith.constant 0 : i32
    %c0_i32_1 = arith.constant 0 : i32
    return %c0_i32, %c0_i32_0 : i32, i32
  }
  func.func @transform_2(%arg0: i32) -> (i32, i32) {
    %c0_i32 = arith.constant 0 : i32
    %c0_i32_0 = arith.constant 0 : i32
    %c0_i32_1 = arith.constant 0 : i32
    return %c0_i32, %c0_i32_0 : i32, i32
  }
  func.func @transform_3(%arg0: i32) -> (i32, i32) {
    %c0_i32 = arith.constant 0 : i32
    %c0_i32_0 = arith.constant 0 : i32
    return %arg0, %c0_i32 : i32, i32
  }
}

</mosaic_0001>

<bundles_post_ra>
// kernel: tpu_custom_call.1
= control target key start
LH: loop header
LB: loop body
LE: loop exit
PB: predicated region body
PF: predicated region fallthrough
CT: control target
= control target key end

     0   :  { %v169_v3 = vmov 0.0|0.0   ;;  %vm170_vm0 = vmmov 0   ;;  %v171_v6 = vmov 0.0   ;;  %s223_s0 = inlined_call_operand.vmem [shape: f32[8,32], index: 0, kind: input, shape index: {}]   ;;  %s224_s1 = inlined_call_operand.vmem [shape: f32[32,16], index: 1, kind: input, shape index: {}]   ;;  %s225_s2 = inlined_call_operand.vmem [shape: f32[1,16], index: 2, kind: input, shape index: {}]   ;;  %s226_s3 = inlined_call_operand.hbm [shape: f32[8,16], index: 3, kind: output, shape index: {}]  }
   0x1   :  { %v16_v0 = vld [vmem:[%s224_s1] sm:$0xff]  ;;  %v17_v1 = vld [vmem:[%s224_s1 + $0x8] sm:$0xff]  ;;  %v18_v2 = vld [vmem:[%s224_s1 + $0x10] sm:$0xff]  ;;  %135 = vmatprep.subr.bf16.mxu0 %v169_v3  ;;  %132 = vmatprep.mubr.msk.f32.mxu0 %vm170_vm0, %v171_v6 }
   0x2   :  { %v136_v4 = vpack.c.bf16 %v17_v1, %v16_v0  ;;  %v19_v5 = vld [vmem:[%s224_s1 + $0x18] sm:$0xff] }
   0x3   :  { %8 = vsyncpa [#allocation3], 0  ;;  %v139_v7 = vpack.c.bf16 %v19_v5, %v18_v2  ;;  %v15_v8 = vld [vmem:[%s223_s0] sm:$0xff]  ;;  %vm27_vm1 = vcmask 261120   ;;  %s172_s24 = smov [#allocation2]   ;;  %vm101_vm2 = vcmask 130048  }
   0x4   :  { %137 = vmatpush3.bf16.msra.mxu0 %v136_v4  ;;  %v117_v9 = vld [vmem:[%s225_s2] ss:$0 sm:$0xff]  ;;  %s109_s1 = sshll.u32 %s172_s24, 4  ;;  %s110_s1 = int_to_ptr.vmem [resolvable:$true] %s109_s1 }
   0x5   :  { %138 = vmatprep.subr.bf16.mxu0 %v169_v3  ;;  %s145_s25 = scalar_lea.vmem %s110_s1, 128  ;;  %p150_p1 = scmp.lt.s32.totalorder %s110_s1, %s110_s1 }
   0x6   :  { %p146_p0 = scmp.ne.s32.totalorder %s110_s1, %s145_s25  ;;  %p151_p2 = scmp.lt.s32.totalorder %s145_s25, %s145_s25 }
   0x8   :  { %140 = vmatpush3.bf16.msra.mxu0 %v139_v7  ;;  %p152_p3 = por %p151_p2, %p150_p1 }
   0xa   :  { %p153_p4 = pnand %p152_p3, %p146_p0 }
   0xb   :  { %133 = vmatmul.mubr.msk.f32.vlgmr.msra.gmra.mrb[0].mxu0 %vm27_vm1, %v15_v8 }
  0xde   :  { %v97_v10 = vpop.f32.mrb[0].mxu0 }
  0xdf   :  { %v98_v11 = vadd.f32 %v117_v9, %v97_v10  ;;  %v134_v12 = vpop.f32.mrb[1].mxu0 }
  0xe1   :  { %102 = vst.msk [vmem:[#allocation2] sm:$0xff] %vm101_vm2, %v98_v11 }
  0xe2   :  { %156 = shalt.err (!%p153_p4)
}
  0xe3   :  { %s157_s27 = scalar_lea.hbm %s226_s3, 128 }
  0xe4   :  { %p158_p5 = scmp.ne.s32.totalorder %s226_s3, %s157_s27  ;;  %p161_p6 = scmp.lt.u32.totalorder %s157_s27, %s226_s3 }
  0xe6   :  { %p163_p7 = pnand %p161_p6, %p158_p5 }
  0xe8   :  { %166 = shalt.err (!%p163_p7)
}
  0xe9   :  { %112 = dma.vmem_to_hbm [thread:$0]  %s110_s1, 128, %s226_s3, [#allocation3]  }
  0xea   :  { %167 = dma.done.wait [#allocation3], 128  }
  0xeb   :  { %168 = vsyncadd [#allocation3], 4294967168 }
  0xec   :  { %116 = vsyncpa [#allocation3], 1 }

</bundles_post_ra>
